<compile_context>
chip_gen: v6e
topology: v6e:2x2x1
jax: 0.10.0
libtpu: 0.0.40
codegen_flags: <defaults>
</compile_context>

<pallas_src>
import numpy as np
import jax
import jax.numpy as jnp
from jax import lax
from jax.experimental import pallas as pl
from jax.experimental.pallas import tpu as pltpu

BN_EPS = 1e-5


# ----------------------------------------------------------------------------
# Fused DoubleConvolution kernel (packed-lane layout)
# ----------------------------------------------------------------------------
def _fused_double_conv(xp_packed, w1b, w2b, gb, p_mat, *, N, H, W, cin, cmid, cout):
    """Runs (Conv3x3 -> train-BN -> ReLU) x 2 on a packed, halo-padded input.

    xp_packed : (N, H+2, (W+2)*cin) f32   zero-padded concat input, (W,C) packed in lanes
    w1b, w2b  : (3, (W+2)*Cin, W*Cout) bf16 banded conv weights (dx taps + halo folded in)
    gb        : (4, W*cout) f32            rows = [gamma1, beta1, gamma2, beta2], lane-packed
    p_mat     : (W*cout, W*cout) f32       block-averaging projection for per-channel BN stats
    returns   : (N*H, W*cout) f32          lane-dense packed output
    """
    assert cmid == cout, "DoubleConvolution uses out_ch for both convolutions"
    lin = (W + 2) * cin          # packed lane width of the padded concat input
    lmid = (W + 2) * cmid        # packed lane width of the padded intermediate
    lout = W * cout              # packed lane width of the (lane-dense) output
    inv_rows = 1.0 / float(N * H)

    def kernel(xp_ref, w1_ref, w2_ref, gb_ref, p_ref, o_ref, y1p_ref):

        def conv3x3(src_ref, w_ref):
            # 3x3 conv as three banded GEMMs (one per kernel row).  The banded
            # weight folds the three dx taps and the zero halo columns, so the
            # only data movement is a sublane-offset row slice -- no im2col.
            # bf16 MXU operands, f32 accumulation.
            acc = jnp.dot(src_ref[:, 0:H, :].reshape(N * H, -1).astype(jnp.bfloat16),
                          w_ref[0], preferred_element_type=jnp.float32)
            acc = acc + jnp.dot(
                src_ref[:, 1:H + 1, :].reshape(N * H, -1).astype(jnp.bfloat16),
                w_ref[1], preferred_element_type=jnp.float32)
            acc = acc + jnp.dot(
                src_ref[:, 2:H + 2, :].reshape(N * H, -1).astype(jnp.bfloat16),
                w_ref[2], preferred_element_type=jnp.float32)
            return acc                                        # (N*H, W*cout) f32

        def bn_relu(acc, gamma_p, beta_p):
            # Train-mode BatchNorm with two-pass (centered) variance.  p_ref maps
            # per-(x, channel) lane sums to per-channel means replicated back into
            # the packed layout -- a matmul instead of any de-interleave relayout.
            mean_p = jnp.dot(jnp.sum(acc, axis=0, keepdims=True) * inv_rows,
                             p_ref[...], preferred_element_type=jnp.float32)
            xc = acc - mean_p
            var_p = jnp.dot(jnp.sum(xc * xc, axis=0, keepdims=True) * inv_rows,
                            p_ref[...], preferred_element_type=jnp.float32)
            scale = gamma_p * lax.rsqrt(var_p + BN_EPS)
            return jnp.maximum(xc * scale + beta_p, 0.0)      # ReLU

        gb_v = gb_ref[...]                                    # (4, W*cout) f32

        # ---- stage 1: Conv3x3 + BN + ReLU ---------------------------------
        y1 = bn_relu(conv3x3(xp_ref, w1_ref), gb_v[0:1, :], gb_v[1:2, :])

        # ---- stage-1 -> stage-2 handoff never leaves VMEM ------------------
        # Zero only the halo ring; the interior is fully overwritten below.
        zrow = jnp.zeros((N, 1, lmid), jnp.float32)
        zcol = jnp.zeros((N, H, cmid), jnp.float32)
        y1p_ref[:, 0:1, :] = zrow
        y1p_ref[:, H + 1:H + 2, :] = zrow
        y1p_ref[:, 1:H + 1, 0:cmid] = zcol
        y1p_ref[:, 1:H + 1, lmid - cmid:lmid] = zcol
        y1p_ref[:, 1:H + 1, cmid:(W + 1) * cmid] = y1.reshape(N, H, W * cmid)

        # ---- stage 2: Conv3x3 + BN + ReLU ---------------------------------
        y2 = bn_relu(conv3x3(y1p_ref, w2_ref), gb_v[2:3, :], gb_v[3:4, :])
        o_ref[...] = y2.astype(o_ref.dtype)                   # lane-dense (N*H, 128)

    flops = (2 * 3 * (N * H) * lin * (W * cmid)       # stage-1 banded GEMMs
             + 2 * 3 * (N * H) * lmid * lout          # stage-2 banded GEMMs
             + 4 * 2 * lout * lout)                   # BN stat projections
    bytes_accessed = (xp_packed.size * 4 + w1b.size * 2 + w2b.size * 2
                      + gb.size * 4 + p_mat.size * 4 + (N * H) * lout * 4)

    return pl.pallas_call(
        kernel,
        out_shape=jax.ShapeDtypeStruct((N * H, lout), jnp.float32),
        # Train-mode BN needs full-batch statistics and the whole problem is a
        # few hundred KB, so a single program is the right shape here.
        # TODO(synk): at real U-Net scale, tile over N / H-rows (1-row halo) with
        # two-phase BN stats and a 'parallel' leading axis for megacore/v7x.
        grid=(1,),
        in_specs=[
            pl.BlockSpec((N, H + 2, lin), lambda i: (0, 0, 0)),
            pl.BlockSpec((3, lin, W * cmid), lambda i: (0, 0, 0)),
            pl.BlockSpec((3, lmid, lout), lambda i: (0, 0, 0)),
            pl.BlockSpec((4, lout), lambda i: (0, 0)),
            pl.BlockSpec((lout, lout), lambda i: (0, 0)),
        ],
        out_specs=pl.BlockSpec((N * H, lout), lambda i: (0, 0)),
        scratch_shapes=[
            pltpu.VMEM((N, H + 2, lmid), jnp.float32),   # halo-padded intermediate
        ],
        compiler_params=pltpu.CompilerParams(
            dimension_semantics=("arbitrary",)),
        cost_estimate=pl.CostEstimate(flops=flops, transcendentals=2 * lout,
                                      bytes_accessed=bytes_accessed),
    )(xp_packed, w1b, w2b, gb, p_mat)


# ----------------------------------------------------------------------------
# Host-side helpers: upsample matrices and parameter packing
# ----------------------------------------------------------------------------
def _bilinear_pad_matrix(out_total, in_size, pad_before):
    """Interpolation matrix for F.interpolate(scale_factor=2, mode='bilinear',
    align_corners=True), with F.pad's zero rows folded in (negative pad = crop)."""
    up = 2 * in_size
    m = np.zeros((out_total, in_size), np.float32)
    scale = 0.0 if (up <= 1 or in_size <= 1) else (in_size - 1) / (up - 1)
    for i in range(up):
        r = pad_before + i
        if r < 0 or r >= out_total:
            continue
        pos = i * scale
        lo = min(int(np.floor(pos)), max(in_size - 2, 0))
        frac = pos - lo
        m[r, lo] += 1.0 - frac
        if lo + 1 < in_size:
            m[r, lo + 1] += frac
    return jnp.asarray(m)


def _pack_params(raw_params, W):
    """Convert PyTorch-layout parameters into the kernel's banded/packed form.

    Done once per feature-map width W (cheap host-side numpy).  Conv2d biases
    are intentionally dropped: under train-mode BatchNorm the batch-mean
    subtraction cancels a per-channel bias exactly.
    """
    (w1_oihw, _b1, g1, be1), (w2_oihw, _b2, g2, be2) = raw_params
    cout1 = w1_oihw.shape[0]
    cout2, cmid, _, _ = w2_oihw.shape
    assert cout1 == cmid == cout2
    cout = cout2

    def banded(w_oihw):
        co, ci, _, _ = w_oihw.shape
        w = np.asarray(w_oihw, np.float32)
        wb = np.zeros((3, (W + 2) * ci, W * co), np.float32)
        for dy in range(3):
            for x in range(W):
                for dx in range(3):
                    xs = x + dx   # padded-input column feeding output column x
                    wb[dy, xs * ci:(xs + 1) * ci, x * co:(x + 1) * co] = \
                        w[:, :, dy, dx].T
        return jnp.asarray(wb, jnp.bfloat16)

    def tile_w(v):
        return np.tile(np.asarray(v, np.float32).reshape(-1), W)

    w1b = banded(w1_oihw)
    w2b = banded(w2_oihw)
    gb = jnp.asarray(np.stack([tile_w(g1), tile_w(be1), tile_w(g2), tile_w(be2)]),
                     jnp.float32)                                   # (4, W*cout)
    p_mat = jnp.asarray(np.tile(np.eye(cout, dtype=np.float32), (W, W)) / W)
    return w1b, w2b, gb, p_mat


# ----------------------------------------------------------------------------
# Up.forward wrapper
# ----------------------------------------------------------------------------
@jax.jit
def up_forward(x1_nchw, x2_nchw, kernel_params):
    """Up.forward (bilinear=True, train-mode BN).  NCHW in / NCHW out."""
    # TODO(synk): ConvTranspose2d upsample branch (bilinear=False) and eval-mode
    # (running-stats) BatchNorm are not implemented; the module's default
    # configuration (bilinear=True, .train()) is what runs here.
    w1b, w2b, gb, p_mat = kernel_params
    n, c1, h1, w1sz = x1_nchw.shape
    _, c2, H, W = x2_nchw.shape
    cin = c1 + c2
    cout = gb.shape[-1] // W

    # Bilinear 2x upsample (align_corners=True) + F.pad to x2's size +
    # NCHW->NHWC for x1, folded into ONE einsum via zero-padded interp matrices.
    ah = _bilinear_pad_matrix(H, h1, (H - 2 * h1) // 2)
    aw = _bilinear_pad_matrix(W, w1sz, (W - 2 * w1sz) // 2)
    x1_nhwc = jnp.einsum('nchw,Hh,Ww->nHWc', x1_nchw.astype(jnp.float32), ah, aw)

    # Skip connection to NHWC, channel concat ([x2, x1]), 1-pixel zero halo and
    # (W, C) lane packing: one fused XLA copy feeding the kernel.
    x2_nhwc = jnp.transpose(x2_nchw.astype(jnp.float32), (0, 2, 3, 1))
    x = jnp.concatenate([x2_nhwc, x1_nhwc], axis=-1)
    xp = jnp.pad(x, ((0, 0), (1, 1), (1, 1), (0, 0)))
    xp_packed = xp.reshape(n, H + 2, (W + 2) * cin)

    out2d = _fused_double_conv(xp_packed, w1b, w2b, gb, p_mat,
                               N=n, H=H, W=W, cin=cin, cmid=cout, cout=cout)

    out = out2d.reshape(n, H, W, cout)
    return jnp.transpose(out, (0, 3, 1, 2))


# ----------------------------------------------------------------------------
# Pure-JAX float32 reference (for the self-check) and synthetic parameters
# ----------------------------------------------------------------------------
def _reference_forward(x1_nchw, x2_nchw, raw_params):
    (w1, b1, g1, be1), (w2, b2, g2, be2) = raw_params
    _, _, h1, w1sz = x1_nchw.shape
    _, _, H, W = x2_nchw.shape

    ah = _bilinear_pad_matrix(H, h1, (H - 2 * h1) // 2)
    aw = _bilinear_pad_matrix(W, w1sz, (W - 2 * w1sz) // 2)
    x1u = jnp.einsum('nchw,Hh,Ww->ncHW', x1_nchw.astype(jnp.float32), ah, aw)
    x = jnp.concatenate([x2_nchw.astype(jnp.float32), x1u], axis=1)

    def conv_bn_relu(x, w, b, g, be):
        y = lax.conv_general_dilated(
            x, w.astype(jnp.float32), window_strides=(1, 1),
            padding=((1, 1), (1, 1)),
            dimension_numbers=('NCHW', 'OIHW', 'NCHW'),
            precision=lax.Precision.HIGHEST)
        y = y + b.reshape(1, -1, 1, 1)
        mean = jnp.mean(y, axis=(0, 2, 3), keepdims=True)
        var = jnp.mean(jnp.square(y - mean), axis=(0, 2, 3), keepdims=True)
        y = (y - mean) * lax.rsqrt(var + BN_EPS)
        y = y * g.reshape(1, -1, 1, 1) + be.reshape(1, -1, 1, 1)
        return jnp.maximum(y, 0.0)

    return conv_bn_relu(conv_bn_relu(x, w1, b1, g1, be1), w2, b2, g2, be2)


def _init_params(key, in_ch, out_ch):
    """Deterministic synthetic parameters in PyTorch layouts (OIHW conv + bias,
    BatchNorm gamma/beta)."""
    ks = jax.random.split(key, 4)

    def conv(kw, kb, ci, co):
        bound = 1.0 / np.sqrt(ci * 9)
        w = jax.random.uniform(kw, (co, ci, 3, 3), jnp.float32, -bound, bound)
        b = jax.random.uniform(kb, (co,), jnp.float32, -bound, bound)
        return w, b

    w1, b1 = conv(ks[0], ks[1], in_ch, out_ch)
    w2, b2 = conv(ks[2], ks[3], out_ch, out_ch)
    g1 = 1.0 + 0.05 * jnp.arange(out_ch, dtype=jnp.float32)
    be1 = 0.01 * jnp.arange(out_ch, dtype=jnp.float32)
    g2 = 1.0 - 0.03 * jnp.arange(out_ch, dtype=jnp.float32)
    be2 = -0.02 * jnp.arange(out_ch, dtype=jnp.float32)
    return (w1, b1, g1, be1), (w2, b2, g2, be2)


if __name__ == "__main__":
    in_ch, out_ch = 4, 8
    N = 2
    H1 = W1 = 8            # decoder (pre-upsample) spatial size
    H2 = W2 = 16           # skip-connection spatial size

    key = jax.random.PRNGKey(0)
    kx1, kx2, kp = jax.random.split(key, 3)
    x1 = jax.random.normal(kx1, (N, in_ch // 2, H1, W1), dtype=jnp.float32)
    x2 = jax.random.normal(kx2, (N, in_ch // 2, H2, W2), dtype=jnp.float32)

    raw_params = _init_params(kp, in_ch, out_ch)
    kernel_params = _pack_params(raw_params, W2)

    out = jax.block_until_ready(up_forward(x1, x2, kernel_params))

    assert out.shape == (N, out_ch, H2, W2), out.shape
    assert bool(jnp.all(jnp.isfinite(out)))
    assert bool(jnp.all(out >= 0.0))        # ReLU output

    # Pure-JAX float32 reference; bf16 MXU operands with f32 accumulation keep
    # the fused kernel within a few 1e-2 of it.
    ref = jax.block_until_ready(_reference_forward(x1, x2, raw_params))
    err = float(jnp.max(jnp.abs(out - ref)))
    assert err < 0.2, f"max abs error vs f32 reference: {err}"

    print("KERNEL_OK")
</pallas_src>

<mosaic_0001>
module attributes {stable_mosaic.version = 11 : i64} {
  func.func @kernel(%arg0: i32, %arg1: memref<2x18x72xf32, #tpu.memory_space<vmem>>, %arg2: memref<3x72x128xbf16, #tpu.memory_space<vmem>>, %arg3: memref<3x144x128xbf16, #tpu.memory_space<vmem>>, %arg4: memref<4x128xf32, #tpu.memory_space<vmem>>, %arg5: memref<128x128xf32, #tpu.memory_space<vmem>>, %arg6: memref<32x128xf32, #tpu.memory_space<vmem>>, %arg7: memref<2x18x144xf32, #tpu.memory_space<vmem>>) attributes {dimension_semantics = [#tpu.dimension_semantics<arbitrary>], iteration_bounds = array<i64: 1>, scalar_prefetch = 0 : i64, scratch_operands = 1 : i64, tpu.core_type = #tpu.core_type<tc>, window_params = [{pipeline_mode = #tpu.pipeline_mode<synchronous>, transform_indices = @transform_0, window_bounds = array<i64: 2, 18, 72>}, {pipeline_mode = #tpu.pipeline_mode<synchronous>, transform_indices = @transform_1, window_bounds = array<i64: 3, 72, 128>}, {pipeline_mode = #tpu.pipeline_mode<synchronous>, transform_indices = @transform_2, window_bounds = array<i64: 3, 144, 128>}, {pipeline_mode = #tpu.pipeline_mode<synchronous>, transform_indices = @transform_3, window_bounds = array<i64: 4, 128>}, {pipeline_mode = #tpu.pipeline_mode<synchronous>, transform_indices = @transform_4, window_bounds = array<i64: 128, 128>}, {pipeline_mode = #tpu.pipeline_mode<synchronous>, transform_indices = @transform_5, window_bounds = array<i64: 32, 128>}]} {
    %c0 = arith.constant 0 : index
    %c0_0 = arith.constant 0 : index
    %0 = vector.load %arg4[%c0, %c0_0] : memref<4x128xf32, #tpu.memory_space<vmem>>, vector<4x128xf32>
    %c0_1 = arith.constant 0 : index
    %c0_2 = arith.constant 0 : index
    %c0_3 = arith.constant 0 : index
    %1 = vector.load %arg1[%c0_1, %c0_2, %c0_3] : memref<2x18x72xf32, #tpu.memory_space<vmem>>, vector<2x16x72xf32>
    %2 = vector.shape_cast %1 : vector<2x16x72xf32> to vector<32x72xf32>
    %3 = arith.truncf %2 : vector<32x72xf32> to vector<32x72xbf16>
    %c0_4 = arith.constant 0 : index
    %c0_5 = arith.constant 0 : index
    %c0_6 = arith.constant 0 : index
    %4 = vector.load %arg2[%c0_4, %c0_5, %c0_6] : memref<3x72x128xbf16, #tpu.memory_space<vmem>>, vector<1x72x128xbf16>
    %5 = vector.shape_cast %4 : vector<1x72x128xbf16> to vector<72x128xbf16>
    %cst = arith.constant dense<0.000000e+00> : vector<32x128xf32>
    %6 = tpu.matmul %3, %5, %cst {dimension_numbers = #tpu.dot_dimension_numbers<[1], [0], [0], [1], [0, 0, 1, 1], [], []>} : vector<32x72xbf16>, vector<72x128xbf16>, vector<32x128xf32> -> vector<32x128xf32>
    %c0_7 = arith.constant 0 : index
    %c1 = arith.constant 1 : index
    %c0_8 = arith.constant 0 : index
    %7 = vector.load %arg1[%c0_7, %c1, %c0_8] : memref<2x18x72xf32, #tpu.memory_space<vmem>>, vector<2x16x72xf32>
    %8 = vector.shape_cast %7 : vector<2x16x72xf32> to vector<32x72xf32>
    %9 = arith.truncf %8 : vector<32x72xf32> to vector<32x72xbf16>
    %c1_9 = arith.constant 1 : index
    %c0_10 = arith.constant 0 : index
    %c0_11 = arith.constant 0 : index
    %10 = vector.load %arg2[%c1_9, %c0_10, %c0_11] : memref<3x72x128xbf16, #tpu.memory_space<vmem>>, vector<1x72x128xbf16>
    %11 = vector.shape_cast %10 : vector<1x72x128xbf16> to vector<72x128xbf16>
    %cst_12 = arith.constant dense<0.000000e+00> : vector<32x128xf32>
    %12 = tpu.matmul %9, %11, %cst_12 {dimension_numbers = #tpu.dot_dimension_numbers<[1], [0], [0], [1], [0, 0, 1, 1], [], []>} : vector<32x72xbf16>, vector<72x128xbf16>, vector<32x128xf32> -> vector<32x128xf32>
    %13 = arith.addf %6, %12 : vector<32x128xf32>
    %c0_13 = arith.constant 0 : index
    %c2 = arith.constant 2 : index
    %c0_14 = arith.constant 0 : index
    %14 = vector.load %arg1[%c0_13, %c2, %c0_14] : memref<2x18x72xf32, #tpu.memory_space<vmem>>, vector<2x16x72xf32>
    %15 = vector.shape_cast %14 : vector<2x16x72xf32> to vector<32x72xf32>
    %16 = arith.truncf %15 : vector<32x72xf32> to vector<32x72xbf16>
    %c2_15 = arith.constant 2 : index
    %c0_16 = arith.constant 0 : index
    %c0_17 = arith.constant 0 : index
    %17 = vector.load %arg2[%c2_15, %c0_16, %c0_17] : memref<3x72x128xbf16, #tpu.memory_space<vmem>>, vector<1x72x128xbf16>
    %18 = vector.shape_cast %17 : vector<1x72x128xbf16> to vector<72x128xbf16>
    %cst_18 = arith.constant dense<0.000000e+00> : vector<32x128xf32>
    %19 = tpu.matmul %16, %18, %cst_18 {dimension_numbers = #tpu.dot_dimension_numbers<[1], [0], [0], [1], [0, 0, 1, 1], [], []>} : vector<32x72xbf16>, vector<72x128xbf16>, vector<32x128xf32> -> vector<32x128xf32>
    %20 = arith.addf %13, %19 : vector<32x128xf32>
    %21 = vector.extract_strided_slice %0 {offsets = [0, 0], sizes = [1, 128], strides = [1, 1]} : vector<4x128xf32> to vector<1x128xf32>
    %22 = vector.extract_strided_slice %0 {offsets = [1, 0], sizes = [1, 128], strides = [1, 1]} : vector<4x128xf32> to vector<1x128xf32>
    %cst_19 = arith.constant dense<0.000000e+00> : vector<128xf32>
    %23 = vector.multi_reduction <add>, %20, %cst_19 [0] : vector<32x128xf32> to vector<128xf32>
    %24 = vector.shape_cast %23 : vector<128xf32> to vector<1x128xf32>
    %cst_20 = arith.constant 3.125000e-02 : f32
    %25 = vector.broadcast %cst_20 : f32 to vector<1x128xf32>
    %26 = arith.mulf %24, %25 : vector<1x128xf32>
    %c0_21 = arith.constant 0 : index
    %c0_22 = arith.constant 0 : index
    %27 = vector.load %arg5[%c0_21, %c0_22] : memref<128x128xf32, #tpu.memory_space<vmem>>, vector<128x128xf32>
    %cst_23 = arith.constant dense<0.000000e+00> : vector<1x128xf32>
    %28 = tpu.matmul %26, %27, %cst_23 {dimension_numbers = #tpu.dot_dimension_numbers<[1], [0], [0], [1], [0, 0, 1, 1], [], []>} : vector<1x128xf32>, vector<128x128xf32>, vector<1x128xf32> -> vector<1x128xf32>
    %29 = vector.broadcast %28 : vector<1x128xf32> to vector<32x128xf32>
    %30 = arith.subf %20, %29 : vector<32x128xf32>
    %31 = arith.mulf %30, %30 : vector<32x128xf32>
    %cst_24 = arith.constant dense<0.000000e+00> : vector<128xf32>
    %32 = vector.multi_reduction <add>, %31, %cst_24 [0] : vector<32x128xf32> to vector<128xf32>
    %33 = vector.shape_cast %32 : vector<128xf32> to vector<1x128xf32>
    %cst_25 = arith.constant 3.125000e-02 : f32
    %34 = vector.broadcast %cst_25 : f32 to vector<1x128xf32>
    %35 = arith.mulf %33, %34 : vector<1x128xf32>
    %c0_26 = arith.constant 0 : index
    %c0_27 = arith.constant 0 : index
    %36 = vector.load %arg5[%c0_26, %c0_27] : memref<128x128xf32, #tpu.memory_space<vmem>>, vector<128x128xf32>
    %cst_28 = arith.constant dense<0.000000e+00> : vector<1x128xf32>
    %37 = tpu.matmul %35, %36, %cst_28 {dimension_numbers = #tpu.dot_dimension_numbers<[1], [0], [0], [1], [0, 0, 1, 1], [], []>} : vector<1x128xf32>, vector<128x128xf32>, vector<1x128xf32> -> vector<1x128xf32>
    %cst_29 = arith.constant 9.99999974E-6 : f32
    %38 = vector.broadcast %cst_29 : f32 to vector<1x128xf32>
    %39 = arith.addf %37, %38 : vector<1x128xf32>
    %40 = math.rsqrt %39 : vector<1x128xf32>
    %41 = arith.mulf %21, %40 : vector<1x128xf32>
    %42 = vector.broadcast %41 : vector<1x128xf32> to vector<32x128xf32>
    %43 = arith.mulf %30, %42 : vector<32x128xf32>
    %44 = vector.broadcast %22 : vector<1x128xf32> to vector<32x128xf32>
    %45 = arith.addf %43, %44 : vector<32x128xf32>
    %cst_30 = arith.constant 0.000000e+00 : f32
    %46 = vector.broadcast %cst_30 : f32 to vector<32x128xf32>
    %47 = arith.maximumf %45, %46 : vector<32x128xf32>
    %cst_31 = arith.constant 0.000000e+00 : f32
    %48 = vector.broadcast %cst_31 : f32 to vector<2x1x144xf32>
    %cst_32 = arith.constant 0.000000e+00 : f32
    %49 = vector.broadcast %cst_32 : f32 to vector<2x16x8xf32>
    %c0_33 = arith.constant 0 : index
    %c0_34 = arith.constant 0 : index
    %c0_35 = arith.constant 0 : index
    %50 = vector.load %arg7[%c0_33, %c0_34, %c0_35] : memref<2x18x144xf32, #tpu.memory_space<vmem>>, vector<2x1x144xf32>
    tpu.vector_store %arg7[%c0_33, %c0_34, %c0_35], %48 {strides = array<i32>} : memref<2x18x144xf32, #tpu.memory_space<vmem>>, vector<2x1x144xf32>,
    %c0_36 = arith.constant 0 : index
    %c17 = arith.constant 17 : index
    %c0_37 = arith.constant 0 : index
    %51 = vector.load %arg7[%c0_36, %c17, %c0_37] : memref<2x18x144xf32, #tpu.memory_space<vmem>>, vector<2x1x144xf32>
    tpu.vector_store %arg7[%c0_36, %c17, %c0_37], %48 {strides = array<i32>} : memref<2x18x144xf32, #tpu.memory_space<vmem>>, vector<2x1x144xf32>,
    %c0_38 = arith.constant 0 : index
    %c1_39 = arith.constant 1 : index
    %c0_40 = arith.constant 0 : index
    %52 = vector.load %arg7[%c0_38, %c1_39, %c0_40] : memref<2x18x144xf32, #tpu.memory_space<vmem>>, vector<2x16x8xf32>
    tpu.vector_store %arg7[%c0_38, %c1_39, %c0_40], %49 {strides = array<i32>} : memref<2x18x144xf32, #tpu.memory_space<vmem>>, vector<2x16x8xf32>,
    %c0_41 = arith.constant 0 : index
    %c1_42 = arith.constant 1 : index
    %c136 = arith.constant 136 : index
    %53 = vector.load %arg7[%c0_41, %c1_42, %c136] : memref<2x18x144xf32, #tpu.memory_space<vmem>>, vector<2x16x8xf32>
    tpu.vector_store %arg7[%c0_41, %c1_42, %c136], %49 {strides = array<i32>} : memref<2x18x144xf32, #tpu.memory_space<vmem>>, vector<2x16x8xf32>,
    %54 = vector.shape_cast %47 : vector<32x128xf32> to vector<2x16x128xf32>
    %c0_43 = arith.constant 0 : index
    %c1_44 = arith.constant 1 : index
    %c8 = arith.constant 8 : index
    %55 = vector.load %arg7[%c0_43, %c1_44, %c8] : memref<2x18x144xf32, #tpu.memory_space<vmem>>, vector<2x16x128xf32>
    tpu.vector_store %arg7[%c0_43, %c1_44, %c8], %54 {strides = array<i32>} : memref<2x18x144xf32, #tpu.memory_space<vmem>>, vector<2x16x128xf32>,
    %c0_45 = arith.constant 0 : index
    %c0_46 = arith.constant 0 : index
    %c0_47 = arith.constant 0 : index
    %56 = vector.load %arg7[%c0_45, %c0_46, %c0_47] : memref<2x18x144xf32, #tpu.memory_space<vmem>>, vector<2x16x144xf32>
    %57 = vector.shape_cast %56 : vector<2x16x144xf32> to vector<32x144xf32>
    %58 = arith.truncf %57 : vector<32x144xf32> to vector<32x144xbf16>
    %c0_48 = arith.constant 0 : index
    %c0_49 = arith.constant 0 : index
    %c0_50 = arith.constant 0 : index
    %59 = vector.load %arg3[%c0_48, %c0_49, %c0_50] : memref<3x144x128xbf16, #tpu.memory_space<vmem>>, vector<1x144x128xbf16>
    %60 = vector.shape_cast %59 : vector<1x144x128xbf16> to vector<144x128xbf16>
    %cst_51 = arith.constant dense<0.000000e+00> : vector<32x128xf32>
    %61 = tpu.matmul %58, %60, %cst_51 {dimension_numbers = #tpu.dot_dimension_numbers<[1], [0], [0], [1], [0, 0, 1, 1], [], []>} : vector<32x144xbf16>, vector<144x128xbf16>, vector<32x128xf32> -> vector<32x128xf32>
    %c0_52 = arith.constant 0 : index
    %c1_53 = arith.constant 1 : index
    %c0_54 = arith.constant 0 : index
    %62 = vector.load %arg7[%c0_52, %c1_53, %c0_54] : memref<2x18x144xf32, #tpu.memory_space<vmem>>, vector<2x16x144xf32>
    %63 = vector.shape_cast %62 : vector<2x16x144xf32> to vector<32x144xf32>
    %64 = arith.truncf %63 : vector<32x144xf32> to vector<32x144xbf16>
    %c1_55 = arith.constant 1 : index
    %c0_56 = arith.constant 0 : index
    %c0_57 = arith.constant 0 : index
    %65 = vector.load %arg3[%c1_55, %c0_56, %c0_57] : memref<3x144x128xbf16, #tpu.memory_space<vmem>>, vector<1x144x128xbf16>
    %66 = vector.shape_cast %65 : vector<1x144x128xbf16> to vector<144x128xbf16>
    %cst_58 = arith.constant dense<0.000000e+00> : vector<32x128xf32>
    %67 = tpu.matmul %64, %66, %cst_58 {dimension_numbers = #tpu.dot_dimension_numbers<[1], [0], [0], [1], [0, 0, 1, 1], [], []>} : vector<32x144xbf16>, vector<144x128xbf16>, vector<32x128xf32> -> vector<32x128xf32>
    %68 = arith.addf %61, %67 : vector<32x128xf32>
    %c0_59 = arith.constant 0 : index
    %c2_60 = arith.constant 2 : index
    %c0_61 = arith.constant 0 : index
    %69 = vector.load %arg7[%c0_59, %c2_60, %c0_61] : memref<2x18x144xf32, #tpu.memory_space<vmem>>, vector<2x16x144xf32>
    %70 = vector.shape_cast %69 : vector<2x16x144xf32> to vector<32x144xf32>
    %71 = arith.truncf %70 : vector<32x144xf32> to vector<32x144xbf16>
    %c2_62 = arith.constant 2 : index
    %c0_63 = arith.constant 0 : index
    %c0_64 = arith.constant 0 : index
    %72 = vector.load %arg3[%c2_62, %c0_63, %c0_64] : memref<3x144x128xbf16, #tpu.memory_space<vmem>>, vector<1x144x128xbf16>
    %73 = vector.shape_cast %72 : vector<1x144x128xbf16> to vector<144x128xbf16>
    %cst_65 = arith.constant dense<0.000000e+00> : vector<32x128xf32>
    %74 = tpu.matmul %71, %73, %cst_65 {dimension_numbers = #tpu.dot_dimension_numbers<[1], [0], [0], [1], [0, 0, 1, 1], [], []>} : vector<32x144xbf16>, vector<144x128xbf16>, vector<32x128xf32> -> vector<32x128xf32>
    %75 = arith.addf %68, %74 : vector<32x128xf32>
    %76 = vector.extract_strided_slice %0 {offsets = [2, 0], sizes = [1, 128], strides = [1, 1]} : vector<4x128xf32> to vector<1x128xf32>
    %77 = vector.extract_strided_slice %0 {offsets = [3, 0], sizes = [1, 128], strides = [1, 1]} : vector<4x128xf32> to vector<1x128xf32>
    %cst_66 = arith.constant dense<0.000000e+00> : vector<128xf32>
    %78 = vector.multi_reduction <add>, %75, %cst_66 [0] : vector<32x128xf32> to vector<128xf32>
    %79 = vector.shape_cast %78 : vector<128xf32> to vector<1x128xf32>
    %cst_67 = arith.constant 3.125000e-02 : f32
    %80 = vector.broadcast %cst_67 : f32 to vector<1x128xf32>
    %81 = arith.mulf %79, %80 : vector<1x128xf32>
    %c0_68 = arith.constant 0 : index
    %c0_69 = arith.constant 0 : index
    %82 = vector.load %arg5[%c0_68, %c0_69] : memref<128x128xf32, #tpu.memory_space<vmem>>, vector<128x128xf32>
    %cst_70 = arith.constant dense<0.000000e+00> : vector<1x128xf32>
    %83 = tpu.matmul %81, %82, %cst_70 {dimension_numbers = #tpu.dot_dimension_numbers<[1], [0], [0], [1], [0, 0, 1, 1], [], []>} : vector<1x128xf32>, vector<128x128xf32>, vector<1x128xf32> -> vector<1x128xf32>
    %84 = vector.broadcast %83 : vector<1x128xf32> to vector<32x128xf32>
    %85 = arith.subf %75, %84 : vector<32x128xf32>
    %86 = arith.mulf %85, %85 : vector<32x128xf32>
    %cst_71 = arith.constant dense<0.000000e+00> : vector<128xf32>
    %87 = vector.multi_reduction <add>, %86, %cst_71 [0] : vector<32x128xf32> to vector<128xf32>
    %88 = vector.shape_cast %87 : vector<128xf32> to vector<1x128xf32>
    %cst_72 = arith.constant 3.125000e-02 : f32
    %89 = vector.broadcast %cst_72 : f32 to vector<1x128xf32>
    %90 = arith.mulf %88, %89 : vector<1x128xf32>
    %c0_73 = arith.constant 0 : index
    %c0_74 = arith.constant 0 : index
    %91 = vector.load %arg5[%c0_73, %c0_74] : memref<128x128xf32, #tpu.memory_space<vmem>>, vector<128x128xf32>
    %cst_75 = arith.constant dense<0.000000e+00> : vector<1x128xf32>
    %92 = tpu.matmul %90, %91, %cst_75 {dimension_numbers = #tpu.dot_dimension_numbers<[1], [0], [0], [1], [0, 0, 1, 1], [], []>} : vector<1x128xf32>, vector<128x128xf32>, vector<1x128xf32> -> vector<1x128xf32>
    %cst_76 = arith.constant 9.99999974E-6 : f32
    %93 = vector.broadcast %cst_76 : f32 to vector<1x128xf32>
    %94 = arith.addf %92, %93 : vector<1x128xf32>
    %95 = math.rsqrt %94 : vector<1x128xf32>
    %96 = arith.mulf %76, %95 : vector<1x128xf32>
    %97 = vector.broadcast %96 : vector<1x128xf32> to vector<32x128xf32>
    %98 = arith.mulf %85, %97 : vector<32x128xf32>
    %99 = vector.broadcast %77 : vector<1x128xf32> to vector<32x128xf32>
    %100 = arith.addf %98, %99 : vector<32x128xf32>
    %cst_77 = arith.constant 0.000000e+00 : f32
    %101 = vector.broadcast %cst_77 : f32 to vector<32x128xf32>
    %102 = arith.maximumf %100, %101 : vector<32x128xf32>
    %c0_78 = arith.constant 0 : index
    %c0_79 = arith.constant 0 : index
    %103 = vector.load %arg6[%c0_78, %c0_79] : memref<32x128xf32, #tpu.memory_space<vmem>>, vector<32x128xf32>
    tpu.vector_store %arg6[%c0_78, %c0_79], %102 {strides = array<i32>} : memref<32x128xf32, #tpu.memory_space<vmem>>, vector<32x128xf32>,
    return
  }
  func.func @transform_0(%arg0: i32) -> (i32, i32, i32) {
    %c0_i32 = arith.constant 0 : i32
    %c0_i32_0 = arith.constant 0 : i32
    %c0_i32_1 = arith.constant 0 : i32
    %c0_i32_2 = arith.constant 0 : i32
    return %c0_i32, %c0_i32_0, %c0_i32_1 : i32, i32, i32
  }
  func.func @transform_1(%arg0: i32) -> (i32, i32, i32) {
    %c0_i32 = arith.constant 0 : i32
    %c0_i32_0 = arith.constant 0 : i32
    %c0_i32_1 = arith.constant 0 : i32
    %c0_i32_2 = arith.constant 0 : i32
    return %c0_i32, %c0_i32_0, %c0_i32_1 : i32, i32, i32
  }
  func.func @transform_2(%arg0: i32) -> (i32, i32, i32) {
    %c0_i32 = arith.constant 0 : i32
    %c0_i32_0 = arith.constant 0 : i32
    %c0_i32_1 = arith.constant 0 : i32
    %c0_i32_2 = arith.constant 0 : i32
    return %c0_i32, %c0_i32_0, %c0_i32_1 : i32, i32, i32
  }
  func.func @transform_3(%arg0: i32) -> (i32, i32) {
    %c0_i32 = arith.constant 0 : i32
    %c0_i32_0 = arith.constant 0 : i32
    %c0_i32_1 = arith.constant 0 : i32
    return %c0_i32, %c0_i32_0 : i32, i32
  }
  func.func @transform_4(%arg0: i32) -> (i32, i32) {
    %c0_i32 = arith.constant 0 : i32
    %c0_i32_0 = arith.constant 0 : i32
    %c0_i32_1 = arith.constant 0 : i32
    return %c0_i32, %c0_i32_0 : i32, i32
  }
  func.func @transform_5(%arg0: i32) -> (i32, i32) {
    %c0_i32 = arith.constant 0 : i32
    %c0_i32_0 = arith.constant 0 : i32
    %c0_i32_1 = arith.constant 0 : i32
    return %c0_i32, %c0_i32_0 : i32, i32
  }
}

</mosaic_0001>

<bundles_post_ra>
// kernel: up_forward.1
= control target key start
LH: loop header
LB: loop body
LE: loop exit
PB: predicated region body
PF: predicated region fallthrough
CT: control target
= control target key end

     0   :  { %vm87_vm0 = vcmask 1043456   ;;  %vm80_vm1 = vcmask 588800   ;;  %v1772_v36 = vmov 0.0   ;;  %vm1773_vm2 = vmmov 0   ;;  %s1775_s8 = smov 8   ;;  %s2347_s1 = inlined_call_operand.vmem [shape: bf16[3,72,128], index: 1, kind: input, shape index: {}]   ;;  %s2348_s0 = inlined_call_operand.vmem [shape: f32[2,18,72], index: 0, kind: input, shape index: {}]   ;;  %s2349_s4 = inlined_call_operand.vmem [shape: f32[128,128], index: 4, kind: input, shape index: {}]   ;;  %s2350_s2 = inlined_call_operand.vmem [shape: bf16[3,144,128], index: 2, kind: input, shape index: {}]   ;;  %s2351_s3 = inlined_call_operand.vmem [shape: f32[4,128], index: 3, kind: input, shape index: {}]   ;;  %s2352_s5 = inlined_call_operand.vmem [shape: f32[32,128], index: 5, kind: output, shape index: {}]  }
   0x1   :  { %v1726_v0 = vld [vmem:[%s2347_s1 + $0x44] ss:$0 sps:$4 sm:$0xff]   ;;  %v1727_v1 = vld [vmem:[%s2347_s1 + $0x20] ss:$0 sps:$4 sm:$0xff]   ;;  %v1729_v5 = vld [vmem:[%s2347_s1 + $0x18] sm:$0xff]   ;;  %vm559_vm4 = vcmask 57344  }
   0x2   :  { %1719 = vmatprep.subr.msk.bf16.mxu0 %vm87_vm0, %v1726_v0  ;;  %v89_v2 = vsel %vm87_vm0, %v1726_v0, 0  ;;  %v1728_v3 = vld [vmem:[%s2347_s1 + $0x3c] sm:$0xff]   ;;  %1720 = vmatprep.subr.msk.bf16.mxu1 %vm87_vm0, %v1727_v1  ;;  %v174_v4 = vsel %vm87_vm0, %v1727_v1, 0  ;;  %v1730_v6 = vld [vmem:[%s2347_s1 + $0x34] sm:$0xff]   ;;  %v1732_v8 = vld [vmem:[%s2347_s1 + $0x2c] sm:$0xff]   ;;  %vm568_vm5 = vcmask 122944  }
   0x3   :  { %1538 = vmatpush3.bf16.msra.mxu0 %v89_v2  ;;  %1552 = vmatpush3.bf16.msra.mxu1 %v174_v4  ;;  %v1731_v7 = vld [vmem:[%s2347_s1 + $0x10] sm:$0xff]   ;;  %v1733_v9 = vld [vmem:[%s2347_s1 + $0x8] sm:$0xff]   ;;  %v22_v13 = vld [vmem:[%s2348_s0] sm:$0xff]  ;;  %560 = vst.msk [vmem:[#allocation2 + $0x20] sm:$0x1] %vm559_vm4, %v1772_v36  ;;  %vm555_vm6 = vcmask 64513  }
   0x4   :  { %1539 = vmatprep.subr.bf16.mxu0 %v1728_v3  ;;  %1553 = vmatprep.subr.bf16.mxu1 %v1729_v5  ;;  %v37_v10 = vld [vmem:[%s2348_s0 + $0x1] sm:$0xff]  ;;  %v38_v11 = vld [vmem:[%s2348_s0 + $0x9] sm:$0xff]  ;;  %v39_v18 = vld [vmem:[%s2348_s0 + $0x19] sm:$0xff]  ;;  %569 = vst.msk [vmem:[#allocation2 + $0x28] sm:$0x1] %vm568_vm5, %v1772_v36  ;;  %vm564_vm7 = vcmask 130113  }
   0x5   :  { %v41_v12 = vpack.c.bf16 %v38_v11, %v37_v10  ;;  %v23_v14 = vld [vmem:[%s2348_s0 + $0x8] sm:$0xff]  ;;  %v1735_v17 = vld [vmem:[%s2347_s1] sm:$0xff]   ;;  %v24_v20 = vld [vmem:[%s2348_s0 + $0x18] sm:$0xff]  ;;  %563 = vst.msk [vmem:[#allocation2 + $0x50] sm:$0x1] %vm559_vm4, %v1772_v36  ;;  %vm557_vm8 = vcmask 64512  }
   0x6   :  { %v1734_v15 = vld [vmem:[%s2347_s1 + $0x24] sm:$0xff]   ;;  %v26_v16 = vpack.c.bf16 %v23_v14, %v22_v13  ;;  %v1738_v30 = vld [vmem:[%s2347_s1 + $0x58] sm:$0xff]   ;;  %v1739_v31 = vld [vmem:[%s2347_s1 + $0x50] sm:$0xff]   ;;  %572 = vst.msk [vmem:[#allocation2 + $0x58] sm:$0x1] %vm568_vm5, %v1772_v36  ;;  %vm566_vm9 = vcmask 130112  }
   0x7   :  { %1540 = vmatpush3.bf16.msra.mxu0 %v1728_v3  ;;  %1554 = vmatpush3.bf16.msra.mxu1 %v1729_v5  ;;  %v40_v19 = vld [vmem:[%s2348_s0 + $0x21] sm:$0xff]  ;;  %v226_v24 = vld [vmem:[%s2348_s0 + $0xa] sm:$0xff]  ;;  %v1903_v37 = vld [vmem:[%s2349_s4 + $0x78] sm:$0xff]  ;;  %556 = vst.msk [vmem:[#allocation2] sm:$0xfe] %vm555_vm6, %v1772_v36  ;;  %vm577_vm10 = vcmask 1040384  }
   0x8   :  { %1541 = vmatprep.subr.bf16.mxu0 %v1730_v6  ;;  %1555 = vmatprep.subr.bf16.mxu1 %v1731_v7  ;;  %v25_v21 = vld [vmem:[%s2348_s0 + $0x20] sm:$0xff]  ;;  %v1736_v22 = vld [vmem:[%s2347_s1 + $0x68] ss:$0 sps:$4 sm:$0xff]   ;;  %v42_v25 = vpack.c.bf16 %v40_v19, %v39_v18  ;;  %v1913_v38 = vld [vmem:[%s2349_s4 + $0x70] sm:$0xff]  ;;  %v426_v19 = vlaneseq  ;;  %565 = vst.msk [vmem:[#allocation2 + $0x8] sm:$0xfe] %vm564_vm7, %v1772_v36 }
   0x9   :  { %1547 = vmatprep.mubr.msk.bf16.mxu0 %vm80_vm1, %v41_v12  ;;  %1561 = vmatprep.mubr.msk.bf16.mxu1 %vm80_vm1, %v26_v16  ;;  %v225_v23 = vld [vmem:[%s2348_s0 + $0x2] sm:$0xff]  ;;  %v27_v26 = vpack.c.bf16 %v25_v21, %v24_v20  ;;  %v275_v27 = vsel %vm87_vm0, %v1736_v22, 0  ;;  %v227_v33 = vld [vmem:[%s2348_s0 + $0x1a] sm:$0xff]  ;;  %v1948_v42 = vld [vmem:[%s2349_s4 + $0x50] sm:$0xff]  ;;  %561 = vst.msk [vmem:[#allocation2 + $0x30] sm:$0xfe] %vm555_vm6, %v1772_v36 }
   0xa   :  { %v1737_v28 = vld [vmem:[%s2347_s1 + $0x60] sm:$0xff]   ;;  %v229_v29 = vpack.c.bf16 %v226_v24, %v225_v23  ;;  %v1740_v32 = vld [vmem:[%s2347_s1 + $0x48] sm:$0xff]   ;;  %v1939_v41 = vld [vmem:[%s2349_s4 + $0x58] sm:$0xff]  ;;  %vm542_vm3 = vcmp.lt.s32.totalorder %v426_v19, 144  ;;  %v2051_v20 = vshrl.u32 %v426_v19, 7  ;;  %558 = vst.msk [vmem:[#allocation2 + $0x10] sm:$0xff] %vm557_vm8, %v1772_v36 }
   0xb   :  { %1542 = vmatpush3.bf16.msra.mxu0 %v1730_v6  ;;  %1556 = vmatpush3.bf16.msra.mxu1 %v1731_v7  ;;  %v228_v34 = vld [vmem:[%s2348_s0 + $0x22] sm:$0xff]  ;;  %v1975_v45 = vld [vmem:[%s2349_s4 + $0x38] sm:$0xff]  ;;  %v1984_v46 = vld [vmem:[%s2349_s4 + $0x30] sm:$0xff]  ;;  %544 = vst.msk [vmem:[#allocation2] ss:$8 sm:$0x3] %vm542_vm3, %v1772_v36 }
   0xc   :  { %1543 = vmatprep.subr.bf16.mxu0 %v1732_v8  ;;  %1557 = vmatprep.subr.bf16.mxu1 %v1733_v9  ;;  %v230_v35 = vpack.c.bf16 %v228_v34, %v227_v33  ;;  %v1921_v39 = vld [vmem:[%s2349_s4 + $0x68] sm:$0xff]  ;;  %v1930_v40 = vld [vmem:[%s2349_s4 + $0x60] sm:$0xff]  ;;  %v2007_v49 = vld [vmem:[%s2349_s4 + $0x18] sm:$0xff]  ;;  %547 = vst.msk [vmem:[#allocation2 + $0x30] ss:$8 sm:$0x3] %vm542_vm3, %v1772_v36 }
   0xd   :  { %v1957_v43 = vld [vmem:[%s2349_s4 + $0x48] sm:$0xff]  ;;  %v1966_v44 = vld [vmem:[%s2349_s4 + $0x40] sm:$0xff]  ;;  %v2017_v50 = vld [vmem:[%s2349_s4 + $0x10] sm:$0xff]  ;;  %550 = vst.msk [vmem:[#allocation2 + $0x21] ss:$8 sm:$0x3] %vm542_vm3, %v1772_v36 }
   0xe   :  { %v1993_v47 = vld [vmem:[%s2349_s4 + $0x28] sm:$0xff]  ;;  %v2000_v48 = vld [vmem:[%s2349_s4 + $0x20] sm:$0xff]  ;;  %553 = vst.msk [vmem:[#allocation2 + $0x51] ss:$8 sm:$0x3] %vm542_vm3, %v1772_v36  ;;  %v2054_v21 = vsub.s32 0, %v2051_v20 }
   0xf   :  { %1544 = vmatpush3.bf16.msra.mxu0 %v1732_v8  ;;  %1558 = vmatpush3.bf16.msra.mxu1 %v1733_v9  ;;  %v2026_v51 = vld [vmem:[%s2349_s4 + $0x8] sm:$0xff]  ;;  %v2035_v52 = vld [vmem:[%s2349_s4] sm:$0xff]  ;;  %570 = vst.msk [vmem:[#allocation2 + $0x38] sm:$0xfe] %vm564_vm7, %v1772_v36  ;;  %v1754_v19 = vld [vmem:[%s2350_s2 + $0x50] sm:$0xff]   ;;  %vm608_vm11 = vcmask 1040448  }
  0x10   :  { %1545 = vmatprep.subr.bf16.mxu0 %v1734_v15  ;;  %1559 = vmatprep.subr.bf16.mxu1 %v1735_v17  ;;  %567 = vst.msk [vmem:[#allocation2 + $0x18] sm:$0xff] %vm566_vm9, %v1772_v36  ;;  %571 = vst.msk [vmem:[#allocation2 + $0x48] sm:$0xff] %vm566_vm9, %v1772_v36  ;;  %vm602_vm12 = vcmask 1047617   ;;  %vm605_vm13 = vcmask 1047616   ;;  %vm773_vm14 = vcmask 130048   ;;  %vm667_vm15 = vcmask 1046528  }
  0x11   :  { %562 = vst.msk [vmem:[#allocation2 + $0x40] sm:$0xff] %vm557_vm8, %v1772_v36 }
  0x13   :  { %1546 = vmatpush3.bf16.msra.mxu0 %v1734_v15  ;;  %1560 = vmatpush3.bf16.msra.mxu1 %v1735_v17 }
  0x14   :  { %1721 = vmatprep.subr.msk.bf16.mxu0 %vm87_vm0, %v1736_v22  ;;  %1579 = vmatprep.subr.mxu1 %v1772_v36  ;;  %vm954_vm0 = vcmask 1045504  }
  0x16   :  { %1548 = vmatmul.mubr.msk.bf16.vlgmr.msra.gmra.mxu0 %vm80_vm1, %v42_v25  ;;  %1562 = vmatmul.mubr.msk.bf16.vlgmr.msra.gmra.mxu1 %vm80_vm1, %v27_v26 }
  0x17   :  { %1566 = vmatpush3.bf16.msra.mxu0 %v275_v27  ;;  %1575 = vmatprep.mubr.msk.bf16.mxu0 %vm80_vm1, %v229_v29 }
  0x18   :  { %1567 = vmatprep.subr.bf16.mxu0 %v1737_v28  ;;  %1580 = vmatpush3.msra.mxu1 %v1903_v37 }
  0x19   :  { %1581 = vmatprep.subr.mxu1 %v1772_v36  ;;  %1611 = vmatprep.mubr.msk.f32.mxu1 %vm1773_vm2, %v1772_v36 }
  0x1a   :  { %1582 = vmatpush3.msra.mxu1 %v1913_v38 }
  0x1b   :  { %1568 = vmatpush3.bf16.msra.mxu0 %v1737_v28  ;;  %1583 = vmatprep.subr.mxu1 %v1772_v36 }
  0x1c   :  { %1569 = vmatprep.subr.bf16.mxu0 %v1738_v30  ;;  %1584 = vmatpush3.msra.mxu1 %v1921_v39 }
  0x1d   :  { %1585 = vmatprep.subr.mxu1 %v1772_v36 }
  0x1e   :  { %1586 = vmatpush3.msra.mxu1 %v1930_v40 }
  0x1f   :  { %1570 = vmatpush3.bf16.msra.mxu0 %v1738_v30  ;;  %1587 = vmatprep.subr.mxu1 %v1772_v36 }
  0x20   :  { %1571 = vmatprep.subr.bf16.mxu0 %v1739_v31  ;;  %1588 = vmatpush3.msra.mxu1 %v1939_v41 }
  0x21   :  { %1589 = vmatprep.subr.mxu1 %v1772_v36 }
  0x22   :  { %1590 = vmatpush3.msra.mxu1 %v1948_v42 }
  0x23   :  { %1572 = vmatpush3.bf16.msra.mxu0 %v1739_v31  ;;  %1591 = vmatprep.subr.mxu1 %v1772_v36 }
  0x24   :  { %1573 = vmatprep.subr.bf16.mxu0 %v1740_v32  ;;  %1592 = vmatpush3.msra.mxu1 %v1957_v43 }
  0x25   :  { %1593 = vmatprep.subr.mxu1 %v1772_v36 }
  0x26   :  { %1594 = vmatpush3.msra.mxu1 %v1966_v44 }
  0x27   :  { %1574 = vmatpush3.bf16.msra.mxu0 %v1740_v32  ;;  %1595 = vmatprep.subr.mxu1 %v1772_v36 }
  0x28   :  { %1614 = vmatprep.subr.mxu0 %v1772_v36  ;;  %1596 = vmatpush3.msra.mxu1 %v1975_v45 }
  0x29   :  { %1597 = vmatprep.subr.mxu1 %v1772_v36 }
  0x2a   :  { %1576 = vmatmul.mubr.msk.bf16.vlgmr.msra.gmra.mxu0 %vm80_vm1, %v230_v35  ;;  %1598 = vmatpush3.msra.mxu1 %v1984_v46 }
  0x2b   :  { %1615 = vmatpush3.msra.mxu0 %v1903_v37  ;;  %1599 = vmatprep.subr.mxu1 %v1772_v36 }
  0x2c   :  { %1616 = vmatprep.subr.mxu0 %v1772_v36  ;;  %1600 = vmatpush3.msra.mxu1 %v1993_v47 }
  0x2d   :  { %1617 = vmatpush3.msra.mxu0 %v1913_v38  ;;  %1601 = vmatprep.subr.mxu1 %v1772_v36 }
  0x2e   :  { %1618 = vmatprep.subr.mxu0 %v1772_v36  ;;  %1602 = vmatpush3.msra.mxu1 %v2000_v48 }
  0x2f   :  { %1619 = vmatpush3.msra.mxu0 %v1921_v39  ;;  %1603 = vmatprep.subr.mxu1 %v1772_v36 }
  0x30   :  { %1620 = vmatprep.subr.mxu0 %v1772_v36  ;;  %1604 = vmatpush3.msra.mxu1 %v2007_v49 }
  0x31   :  { %1621 = vmatpush3.msra.mxu0 %v1930_v40  ;;  %1605 = vmatprep.subr.mxu1 %v1772_v36 }
  0x32   :  { %1622 = vmatprep.subr.mxu0 %v1772_v36  ;;  %1606 = vmatpush3.msra.mxu1 %v2017_v50 }
  0x33   :  { %1623 = vmatpush3.msra.mxu0 %v1939_v41  ;;  %1607 = vmatprep.subr.mxu1 %v1772_v36 }
  0x34   :  { %1624 = vmatprep.subr.mxu0 %v1772_v36  ;;  %1608 = vmatpush3.msra.mxu1 %v2026_v51 }
  0x35   :  { %1625 = vmatpush3.msra.mxu0 %v1948_v42  ;;  %1609 = vmatprep.subr.mxu1 %v1772_v36 }
  0x36   :  { %1626 = vmatprep.subr.mxu0 %v1772_v36  ;;  %1610 = vmatpush3.msra.mxu1 %v2035_v52 }
  0x37   :  { %1627 = vmatpush3.msra.mxu0 %v1957_v43  ;;  %1646 = vmatprep.mubr.msk.f32.mxu0 %vm1773_vm2, %v1772_v36 }
  0x38   :  { %1628 = vmatprep.subr.mxu0 %v1772_v36 }
  0x39   :  { %1629 = vmatpush3.msra.mxu0 %v1966_v44 }
  0x3a   :  { %1630 = vmatprep.subr.mxu0 %v1772_v36 }
  0x3b   :  { %1631 = vmatpush3.msra.mxu0 %v1975_v45 }
  0x3c   :  { %1632 = vmatprep.subr.mxu0 %v1772_v36 }
  0x3d   :  { %1633 = vmatpush3.msra.mxu0 %v1984_v46 }
  0x3e   :  { %1634 = vmatprep.subr.mxu0 %v1772_v36 }
  0x3f   :  { %1635 = vmatpush3.msra.mxu0 %v1993_v47 }
  0x40   :  { %1636 = vmatprep.subr.mxu0 %v1772_v36 }
  0x41   :  { %1637 = vmatpush3.msra.mxu0 %v2000_v48 }
  0x42   :  { %1638 = vmatprep.subr.mxu0 %v1772_v36 }
  0x43   :  { %1639 = vmatpush3.msra.mxu0 %v2007_v49 }
  0x44   :  { %1640 = vmatprep.subr.mxu0 %v1772_v36 }
  0x45   :  { %1641 = vmatpush3.msra.mxu0 %v2017_v50 }
  0x46   :  { %1642 = vmatprep.subr.mxu0 %v1772_v36 }
  0x47   :  { %1643 = vmatpush3.msra.mxu0 %v2026_v51 }
  0x48   :  { %1644 = vmatprep.subr.mxu0 %v1772_v36 }
  0x49   :  { %1645 = vmatpush3.msra.mxu0 %v2035_v52 }
  0xd6   :  { %v1549_v53 = vpop.f32.mrf.mxu0  ;;  %v1563_v54 = vpop.f32.mrf.mxu1 }
  0xd7   :  { %v219_v3 = vadd.f32 %v1563_v54, %v1549_v53 }
  0xd8   :  { %v125_v55 = vpop.f32.mrf.mxu0  ;;  %v210_v56 = vpop.f32.mrf.mxu1 }
  0xd9   :  { %v211_v0 = vadd.f32 %v210_v56, %v125_v55 }
  0xda   :  { %v1550_v57 = vpop.f32.mrf.mxu0  ;;  %v1564_v58 = vpop.f32.mrf.mxu1 }
  0xdb   :  { %v222_v6 = vadd.f32 %v1564_v58, %v1550_v57 }
  0xdc   :  { %v128_v59 = vpop.f32.mrf.mxu0  ;;  %v213_v61 = vpop.f32.mrf.mxu1 }
  0xdd   :  { %v214_v1 = vadd.f32 %v213_v61, %v128_v59  ;;  %v1741_v61 = vld [vmem:[%s2350_s2 + $0x38] sm:$0xff]  }
  0xea   :  { %v1577_v60 = vpop.f32.mrf.mxu0 }
  0xeb   :  { %v328_v7 = vadd.f32 %v1577_v60, %v219_v3  ;;  %v1774_v60 = vmov 0   ;;  %v1747_v3 = vld [vmem:[%s2350_s2 + $0x20] sm:$0xff]  }
  0xec   :  { %v311_v62 = vpop.f32.mrf.mxu0  ;;  %889 = vmatprep.subr.bf16.mxu0 %v1774_v60  ;;  %780 = vmatprep.subr.bf16.mxu1 %v1774_v60 }
  0xed   :  { %v326_v4 = vadd.f32 %v311_v62, %v211_v0  ;;  %v1742_v62 = vld [vmem:[%s2350_s2 + $0x80] sm:$0xff]   ;;  %v1744_v0 = vld [vmem:[%s2350_s2 + $0x78] sm:$0xff]  }
  0xee   :  { %v1578_v63 = vpop.f32.mrf.mxu0 }
  0xef   :  { %v329_v9 = vadd.f32 %v1578_v63, %v222_v6  ;;  %v1743_v63 = vld [vmem:[%s2350_s2 + $0x30] sm:$0xff]   ;;  %v1750_v6 = vld [vmem:[%s2350_s2 + $0x60] sm:$0xff]  }
  0xf0   :  { %v314_v2 = vpop.f32.mrf.mxu0 }
  0xf1   :  { %v327_v5 = vadd.f32 %v314_v2, %v214_v1  ;;  %v1745_v1 = vld [vmem:[%s2350_s2 + $0x28] sm:$0xff]   ;;  %v1746_v2 = vld [vmem:[%s2350_s2 + $0x70] sm:$0xff]  }
  0xf3   :  { %v330_v8 = vadd.f32 %v327_v5, %v326_v4 }
  0xf5   :  { %v331_v10 = vadd.f32 %v330_v8, %v328_v7 }
  0xf7   :  { %v332_v11 = vadd.f32 %v331_v10, %v329_v9  ;;  %v2124_v10 = vld [vmem:[%s2351_s3] sm:$0xf] }
  0xf9   :  { %v333_v12 = vrot.slane %v332_v11, 4 }
  0xfb   :  { %v334_v13 = vadd.f32 %v333_v12, %v332_v11  ;;  %v530_v11 = vsub.s32 1, %v2051_v20  ;;  %v1751_v12 = vld [vmem:[%s2350_s2 + $0x10] sm:$0xff]  }
  0xfd   :  { %v335_v14 = vrot.slane %v334_v13, 2 }
  0xff   :  { %v336_v15 = vadd.f32 %v335_v14, %v334_v13  ;;  %v1752_v14 = vld [vmem:[%s2350_s2 + $0x58] sm:$0xff]  }
 0x101   :  { %v337_v16 = vrot.slane %v336_v15, 1 }
 0x103   :  { %v338_v17 = vadd.f32 %v337_v16, %v336_v15 }
 0x105   :  { %v339_v18 = vmul.f32 0.03125, %v338_v17  ;;  %v531_v17 = vrot.slane %v2124_v10, %v530_v11 }
 0x107   :  { %1612 = vmatmul.mubr.f32.vlgmr.msra.gmra.mxu1 %v339_v18  ;;  %v1753_v18 = vld [vmem:[%s2350_s2 + $0x8] sm:$0xff]  }
 0x108   :  { %781 = vmatpush1.bf16.msra.mxu1 %v1742_v62 }
 0x109   :  { %782 = vmatprep.subr.bf16.mxu1 %v1774_v60 }
 0x10c   :  { %783 = vmatpush1.bf16.msra.mxu1 %v1744_v0 }
 0x10d   :  { %784 = vmatprep.subr.bf16.mxu1 %v1774_v60 }
 0x110   :  { %785 = vmatpush1.bf16.msra.mxu1 %v1746_v2 }
 0x111   :  { %786 = vmatprep.subr.bf16.mxu1 %v1774_v60 }
 0x1c7   :  { %v422_v22 = vpop.f32.mrf.mxu1 }
 0x1c8   :  { %v429_v23 = vrot.slane %v422_v22, %v2054_v21 }
 0x1c9   :  { %v1613_v24 = vpop.f32.mrf.mxu1 }
 0x1ca   :  { %v2057_v25 = vsub.f32 %v326_v4, %v429_v23  ;;  %v2059_v26 = vsub.f32 %v327_v5, %v429_v23  ;;  %v2061_v27 = vsub.f32 %v328_v7, %v429_v23  ;;  %v2063_v28 = vsub.f32 %v329_v9, %v429_v23  ;;  %v1748_v4 = vld [vmem:[%s2350_s2 + $0x68] sm:$0xff]   ;;  %v1749_v5 = vld [vmem:[%s2350_s2 + $0x18] sm:$0xff]  }
 0x1cb   :  { %787 = vmatpush1.bf16.msra.mxu1 %v1748_v4 }
 0x1cc   :  { %v434_v29 = vmul.f32 %v2057_v25, %v2057_v25  ;;  %v435_v30 = vmul.f32 %v2059_v26, %v2059_v26  ;;  %v436_v31 = vmul.f32 %v2061_v27, %v2061_v27  ;;  %v437_v33 = vmul.f32 %v2063_v28, %v2063_v28  ;;  %788 = vmatprep.subr.bf16.mxu1 %v1774_v60 }
 0x1ce   :  { %v438_v32 = vadd.f32 %v435_v30, %v434_v29 }
 0x1cf   :  { %789 = vmatpush1.bf16.msra.mxu1 %v1750_v6 }
 0x1d0   :  { %v439_v34 = vadd.f32 %v438_v32, %v436_v31  ;;  %790 = vmatprep.subr.bf16.mxu1 %v1774_v60 }
 0x1d2   :  { %v440_v35 = vadd.f32 %v439_v34, %v437_v33  ;;  %v1755_v33 = vld [vmem:[%s2350_s2] sm:$0xff]  }
 0x1d3   :  { %791 = vmatpush1.bf16.msra.mxu1 %v1752_v14  ;;  %v1757_v34 = vld [vmem:[%s2350_s2 + $0x40] sm:$0xff]  }
 0x1d4   :  { %v441_v53 = vrot.slane %v440_v35, 4  ;;  %792 = vmatprep.subr.bf16.mxu1 %v1774_v60 }
 0x1d6   :  { %v442_v54 = vadd.f32 %v441_v53, %v440_v35  ;;  %v1758_v35 = vld [vmem:[%s2350_s2 + $0x88] sm:$0xff]  }
 0x1d7   :  { %793 = vmatpush1.bf16.msra.mxu1 %v1754_v19 }
 0x1d8   :  { %v443_v55 = vrot.slane %v442_v54, 2  ;;  %794 = vmatprep.subr.bf16.mxu1 %v1774_v60 }
 0x1da   :  { %v444_v56 = vadd.f32 %v443_v55, %v442_v54 }
 0x1dc   :  { %v445_v57 = vrot.slane %v444_v56, 1 }
 0x1de   :  { %v446_v58 = vadd.f32 %v445_v57, %v444_v56 }
 0x1e0   :  { %v447_v59 = vmul.f32 0.03125, %v446_v58 }
 0x1e2   :  { %1647 = vmatmul.mubr.f32.vlgmr.msra.gmra.mxu0 %v447_v59 }
 0x1e3   :  { %890 = vmatpush1.bf16.msra.mxu0 %v1741_v61 }
 0x1e4   :  { %891 = vmatprep.subr.bf16.mxu0 %v1774_v60 }
 0x1e7   :  { %892 = vmatpush1.bf16.msra.mxu0 %v1743_v63 }
 0x1e8   :  { %893 = vmatprep.subr.bf16.mxu0 %v1774_v60 }
 0x1eb   :  { %894 = vmatpush1.bf16.msra.mxu0 %v1745_v1 }
 0x1ec   :  { %895 = vmatprep.subr.bf16.mxu0 %v1774_v60 }
 0x1ef   :  { %896 = vmatpush1.bf16.msra.mxu0 %v1747_v3 }
 0x1f0   :  { %897 = vmatprep.subr.bf16.mxu0 %v1774_v60 }
 0x1f3   :  { %898 = vmatpush1.bf16.msra.mxu0 %v1749_v5 }
 0x1f4   :  { %899 = vmatprep.subr.bf16.mxu0 %v1774_v60 }
 0x1f7   :  { %900 = vmatpush1.bf16.msra.mxu0 %v1751_v12 }
 0x1f8   :  { %901 = vmatprep.subr.bf16.mxu0 %v1774_v60 }
 0x1fb   :  { %902 = vmatpush1.bf16.msra.mxu0 %v1753_v18 }
 0x1fc   :  { %903 = vmatprep.subr.bf16.mxu0 %v1774_v60 }
 0x1ff   :  { %904 = vmatpush1.bf16.msra.mxu0 %v1755_v33 }
 0x200   :  { %919 = vmatprep.subr.bf16.mxu0 %v1774_v60 }
 0x203   :  { %920 = vmatpush2.bf16.msra.mxu0 %v1757_v34 }
 0x204   :  { %1649 = vmatprep.subr.mxu0 %v1772_v36 }
 0x2a2   :  { %v514_v7 = vpop.f32.mrf.mxu0 }
 0x2a3   :  { %v515_v8 = vadd.f32 1e-05, %v514_v7 }
 0x2a4   :  { %v1648_v9 = vpop.f32.mrf.mxu0 }
 0x2a5   :  { %1768 = vrsqrt.f32 %v515_v8 }
 0x2b2   :  { %v1769_v13 = vpop.eup %1768 }
 0x2b3   :  { %v519_v15 = vmul.f32 %v1769_v13, %v2124_v10 }
 0x2b5   :  { %v523_v16 = vrot.slane %v519_v15, %v2054_v21 }
 0x2b7   :  { %v525_v22 = vmul.f32 %v523_v16, %v2059_v26  ;;  %v524_v23 = vmul.f32 %v523_v16, %v2057_v25  ;;  %v526_v24 = vmul.f32 %v523_v16, %v2061_v27  ;;  %v527_v29 = vmul.f32 %v523_v16, %v2063_v28  ;;  %v1756_v25 = vld [vmem:[%s2350_s2 + $0x48] sm:$0xff]  }
 0x2b8   :  { %795 = vmatpush1.bf16.msra.mxu1 %v1756_v25 }
 0x2b9   :  { %v533_v30 = vadd.f32 %v531_v17, %v525_v22  ;;  %v532_v31 = vadd.f32 %v531_v17, %v524_v23  ;;  %v534_v32 = vadd.f32 %v531_v17, %v526_v24  ;;  %v535_v26 = vadd.f32 %v531_v17, %v527_v29  ;;  %810 = vmatprep.subr.bf16.mxu1 %v1774_v60 }
 0x2bb   :  { %v537_v27 = vmax.f32 %v533_v30, 0.0  ;;  %v536_v28 = vmax.f32 %v532_v31, 0.0  ;;  %v538_v55 = vmax.f32 %v534_v32, 0.0  ;;  %v539_v56 = vmax.f32 %v535_v26, 0.0  ;;  %v1759_v31 = vld [vmem:[%s2350_s2 + $0xc8] sm:$0xff]  }
 0x2bc   :  { %811 = vmatpush2.bf16.msra.mxu1 %v1758_v35 }
 0x2bd   :  { %v579_v53 = vrot.slane %v537_v27, 7  ;;  %v578_v54 = vrot.slane %v536_v28, 7  ;;  %v581_v57 = vrot.slane %v538_v55, 7  ;;  %1066 = vmatprep.subr.bf16.mxu1 %v1774_v60  ;;  %v582_v59 = vrot.slane %v539_v56, 7 }
 0x2bf   :  { %588 = vrot.lane.b32.xlu1 %v579_v53, %s1775_s8  ;;  %584 = vrot.lane.b32.xlu0 %v578_v54, %s1775_s8  ;;  %v580_v58 = vsel %vm577_vm10, %v578_v54, %v579_v53  ;;  %v583_v61 = vsel %vm577_vm10, %v581_v57, %v582_v59 }
 0x2c3   :  { %590 = vrot.lane.b32.xlu1 %v581_v57, %s1775_s8  ;;  %586 = vrot.lane.b32.xlu0 %v580_v58, %s1775_s8 }
 0x2c7   :  { %594 = vrot.lane.b32.xlu1 %v582_v59, %s1775_s8  ;;  %592 = vrot.lane.b32.xlu0 %v583_v61, %s1775_s8 }
 0x331   :  { %v589_v62 = vpop.permute.xlu1 %588  ;;  %v585_v63 = vpop.permute.xlu0 %584 }
 0x332   :  { %609 = vst.msk [vmem:[#allocation2 + $0x20] sm:$0x1] %vm608_vm11, %v589_v62 }
 0x333   :  { %610 = vst.msk [vmem:[#allocation2 + $0x28] sm:$0x1] %vm559_vm4, %v589_v62 }
 0x334   :  { %603 = vst.msk [vmem:[#allocation2] sm:$0xfe] %vm602_vm12, %v585_v63 }
 0x335   :  { %604 = vst.msk [vmem:[#allocation2 + $0x8] sm:$0xfe] %vm555_vm6, %v585_v63  ;;  %v591_v0 = vpop.permute.xlu1 %590  ;;  %v587_v1 = vpop.permute.xlu0 %586 }
 0x336   :  { %611 = vst.msk [vmem:[#allocation2 + $0x30] sm:$0xfe] %vm602_vm12, %v591_v0 }
 0x337   :  { %612 = vst.msk [vmem:[#allocation2 + $0x38] sm:$0xfe] %vm555_vm6, %v591_v0 }
 0x338   :  { %606 = vst.msk [vmem:[#allocation2 + $0x10] sm:$0xff] %vm605_vm13, %v587_v1 }
 0x339   :  { %607 = vst.msk [vmem:[#allocation2 + $0x18] sm:$0xff] %vm557_vm8, %v587_v1  ;;  %v595_v2 = vpop.permute.xlu1 %594  ;;  %v593_v3 = vpop.permute.xlu0 %592  ;;  %v649_v8 = vld [vmem:[#allocation2 + $0x20] sm:$0x1] }
 0x33a   :  { %615 = vst.msk [vmem:[#allocation2 + $0x50] sm:$0x1] %vm608_vm11, %v595_v2  ;;  %v650_v5 = vld [vmem:[#allocation2 + $0x28] sm:$0x1]  ;;  %v674_v22 = vrot.slane %v649_v8, 1 }
 0x33b   :  { %616 = vst.msk [vmem:[#allocation2 + $0x58] sm:$0x1] %vm559_vm4, %v595_v2  ;;  %v647_v7 = vld [vmem:[#allocation2] sm:$0xfe]  ;;  %v676_v17 = vrot.slane %v650_v5, 1 }
 0x33c   :  { %613 = vst.msk [vmem:[#allocation2 + $0x40] sm:$0xff] %vm605_vm13, %v593_v3  ;;  %v648_v4 = vld [vmem:[#allocation2 + $0x8] sm:$0xfe]  ;;  %v617_v11 = vld [vmem:[#allocation2] sm:$0xff]  ;;  %v668_v19 = vrot.slane %v647_v7, 1 }
 0x33d   :  { %614 = vst.msk [vmem:[#allocation2 + $0x48] sm:$0xff] %vm557_vm8, %v593_v3  ;;  %v618_v6 = vld [vmem:[#allocation2 + $0x8] sm:$0xff]  ;;  %v671_v13 = vrot.slane %v648_v4, 1  ;;  %v651_v55 = vld [vmem:[#allocation2 + $0x30] sm:$0xfe]  ;;  %v1760_v2 = vld [vmem:[%s2350_s2 + $0xc0] sm:$0xff]  }
 0x33e   :  { %v652_v23 = vld [vmem:[#allocation2 + $0x38] sm:$0xfe]  ;;  %v939_v59 = vld [vmem:[#allocation2 + $0x8] sm:$0xfc]  ;;  %v941_v61 = vld [vmem:[#allocation2 + $0x28] sm:$0x3] }
 0x33f   :  { %v2188_v12 = vld [vmem:[#allocation2 + $0x10] sm:$0xff]  ;;  %v622_v30 = vld [vmem:[#allocation2 + $0x38] sm:$0xff]  ;;  %v681_v54 = vrot.slane %v652_v23, 1  ;;  %v678_v3 = vrot.slane %v651_v55, 1  ;;  %v963_v7 = vrot.slane %v941_v61, 2 }
 0x340   :  { %v2186_v9 = vld [vmem:[#allocation2 + $0x18] sm:$0xff]  ;;  %v625_v16 = vpack.c.bf16 %v2188_v12, %v617_v11  ;;  %v669_v18 = vrot.slane %v2188_v12, 1  ;;  %v621_v5 = vld [vmem:[#allocation2 + $0x30] sm:$0xff] }
 0x341   :  { %v626_v14 = vpack.c.bf16 %v2186_v9, %v618_v6  ;;  %v672_v15 = vrot.slane %v2186_v9, 1  ;;  %v653_v56 = vld [vmem:[#allocation2 + $0x50] sm:$0x1]  ;;  %v959_v62 = vrot.slane %v2186_v9, 2  ;;  %v958_v6 = vrot.slane %v939_v59, 2  ;;  %v1765_v23 = vld [vmem:[%s2350_s2 + $0x98] sm:$0xff]  }
 0x342   :  { %v670_v33 = vsel %vm667_vm15, %v668_v19, %v669_v18  ;;  %v675_v26 = vsel %vm667_vm15, %v669_v18, %v674_v22  ;;  %v654_v27 = vld [vmem:[#allocation2 + $0x58] sm:$0x1]  ;;  %v684_v0 = vrot.slane %v653_v56, 1  ;;  %v1762_v18 = vld [vmem:[%s2350_s2 + $0xb0] sm:$0xff]   ;;  %v1763_v19 = vld [vmem:[%s2350_s2 + $0xa8] sm:$0xff]  }
 0x343   :  { %1417 = vmatprep.mubr.msk.bf16.mxu0 %vm773_vm14, %v626_v14  ;;  %v673_v24 = vsel %vm667_vm15, %v671_v13, %v672_v15  ;;  %v677_v29 = vsel %vm667_vm15, %v672_v15, %v676_v17  ;;  %v2204_v28 = vld [vmem:[#allocation2 + $0x40] sm:$0xff]  ;;  %v696_v34 = vpack.c.bf16 %v675_v26, %v670_v33  ;;  %v686_v57 = vrot.slane %v654_v27, 1  ;;  %v1761_v15 = vld [vmem:[%s2350_s2 + $0xb8] sm:$0xff]   ;;  %v942_v59 = vld [vmem:[#allocation2 + $0x30] sm:$0xfc] }
 0x344   :  { %922 = vmatmul.mubr.bf16.vlgmr.msra.gmra.mxu0 %v625_v16  ;;  %v697_v32 = vpack.c.bf16 %v677_v29, %v673_v24  ;;  %v2202_v25 = vld [vmem:[#allocation2 + $0x48] sm:$0xff]  ;;  %v679_v58 = vrot.slane %v2204_v28, 1  ;;  %v627_v8 = vpack.c.bf16 %v2204_v28, %v621_v5  ;;  %v960_v13 = vsel %vm954_vm0, %v958_v6, %v959_v62  ;;  %v1764_v22 = vld [vmem:[%s2350_s2 + $0xa0] sm:$0xff]   ;;  %v1766_v24 = vld [vmem:[%s2350_s2 + $0x90] sm:$0xff]  }
 0x345   :  { %v628_v35 = vpack.c.bf16 %v2202_v25, %v622_v30  ;;  %v682_v53 = vrot.slane %v2202_v25, 1  ;;  %1650 = vmatpush3.msra.mxu0 %v1903_v37  ;;  %v964_v14 = vsel %vm954_vm0, %v959_v62, %v963_v7  ;;  %v945_v29 = vld [vmem:[#allocation2 + $0x58] sm:$0x3]  ;;  %v938_v30 = vld [vmem:[#allocation2] sm:$0xfc]  ;;  %v969_v26 = vrot.slane %v2202_v25, 2 }
 0x346   :  { %1406 = vmatprep.mubr.msk.bf16.mxu1 %vm773_vm14, %v697_v32  ;;  %1651 = vmatprep.subr.mxu0 %v1772_v36  ;;  %v680_v9 = vsel %vm667_vm15, %v678_v3, %v679_v58  ;;  %v685_v11 = vsel %vm667_vm15, %v679_v58, %v684_v0  ;;  %v984_v17 = vpack.c.bf16 %v964_v14, %v960_v13  ;;  %v956_v32 = vrot.slane %v2188_v12, 2  ;;  %v943_v33 = vld [vmem:[#allocation2 + $0x38] sm:$0xfc] }
 0x347   :  { %813 = vmatmul.mubr.bf16.vlgmr.msra.gmra.mxu1 %v696_v34  ;;  %1418 = vmatprep.mubr.msk.bf16.mxu0 %vm773_vm14, %v628_v35  ;;  %v683_v63 = vsel %vm667_vm15, %v681_v54, %v682_v53  ;;  %v687_v1 = vsel %vm667_vm15, %v682_v53, %v686_v57  ;;  %v698_v16 = vpack.c.bf16 %v685_v11, %v680_v9  ;;  %v973_v27 = vrot.slane %v945_v29, 2  ;;  %v1767_v34 = vld [vmem:[%s2350_s2 + $0xd0] sm:$0xff]  }
 0x348   :  { %1067 = vmatpush1.bf16.msra.mxu1 %v1759_v31  ;;  %1652 = vmatpush3.msra.mxu0 %v1913_v38  ;;  %v699_v4 = vpack.c.bf16 %v687_v1, %v683_v63  ;;  %v940_v31 = vld [vmem:[#allocation2 + $0x20] sm:$0x3]  ;;  %v955_v35 = vrot.slane %v938_v30, 2  ;;  %v968_v12 = vrot.slane %v943_v33, 2  ;;  %v944_v57 = vld [vmem:[#allocation2 + $0x50] sm:$0x3] }
 0x349   :  { %1068 = vmatprep.subr.bf16.mxu1 %v1774_v60  ;;  %1653 = vmatprep.subr.mxu0 %v1772_v36  ;;  %v961_v53 = vrot.slane %v940_v31, 2  ;;  %v974_v56 = vsel %vm954_vm0, %v969_v26, %v973_v27  ;;  %v971_v62 = vrot.slane %v944_v57, 2  ;;  %v965_v63 = vrot.slane %v942_v59, 2 }
 0x34a   :  { %1654 = vmatpush3.msra.mxu0 %v1921_v39  ;;  %1407 = vmatprep.mubr.msk.bf16.mxu1 %vm773_vm14, %v699_v4  ;;  %v957_v54 = vsel %vm954_vm0, %v955_v35, %v956_v32  ;;  %v970_v55 = vsel %vm954_vm0, %v968_v12, %v969_v26 }
 0x34b   :  { %1655 = vmatprep.subr.mxu0 %v1772_v36  ;;  %v962_v25 = vsel %vm954_vm0, %v956_v32, %v961_v53  ;;  %v986_v61 = vpack.c.bf16 %v974_v56, %v970_v55 }
 0x34c   :  { %1069 = vmatpush1.bf16.msra.mxu1 %v1760_v2  ;;  %930 = vmatmul.mubr.bf16.gmra.mxu0 %v627_v8  ;;  %v983_v58 = vpack.c.bf16 %v962_v25, %v957_v54 }
 0x34d   :  { %1070 = vmatprep.subr.bf16.mxu1 %v1774_v60  ;;  %1656 = vmatpush3.msra.mxu0 %v1930_v40 }
 0x34e   :  { %1657 = vmatprep.subr.mxu0 %v1772_v36  ;;  %1681 = vmatprep.mubr.msk.f32.mxu0 %vm1773_vm2, %v1772_v36 }
 0x34f   :  { %821 = vmatmul.mubr.bf16.gmra.mxu1 %v698_v16  ;;  %1658 = vmatpush3.msra.mxu0 %v1939_v41 }
 0x350   :  { %1071 = vmatpush1.bf16.msra.mxu1 %v1761_v15  ;;  %1446 = vmatprep.mubr.msk.bf16.mxu1 %vm773_vm14, %v984_v17 }
 0x351   :  { %1072 = vmatprep.subr.bf16.mxu1 %v1774_v60  ;;  %1659 = vmatprep.subr.mxu0 %v1772_v36 }
 0x352   :  { %1660 = vmatpush3.msra.mxu0 %v1948_v42 }
 0x353   :  { %1661 = vmatprep.subr.mxu0 %v1772_v36 }
 0x354   :  { %1073 = vmatpush1.bf16.msra.mxu1 %v1762_v18  ;;  %1662 = vmatpush3.msra.mxu0 %v1957_v43 }
 0x355   :  { %1074 = vmatprep.subr.bf16.mxu1 %v1774_v60  ;;  %1663 = vmatprep.subr.mxu0 %v1772_v36 }
 0x356   :  { %1664 = vmatpush3.msra.mxu0 %v1966_v44 }
 0x357   :  { %1665 = vmatprep.subr.mxu0 %v1772_v36 }
 0x358   :  { %1075 = vmatpush1.bf16.msra.mxu1 %v1763_v19  ;;  %1666 = vmatpush3.msra.mxu0 %v1975_v45 }
 0x359   :  { %1076 = vmatprep.subr.bf16.mxu1 %v1774_v60  ;;  %1667 = vmatprep.subr.mxu0 %v1772_v36 }
 0x35a   :  { %1668 = vmatpush3.msra.mxu0 %v1984_v46 }
 0x35b   :  { %1669 = vmatprep.subr.mxu0 %v1772_v36 }
 0x35c   :  { %1077 = vmatpush1.bf16.msra.mxu1 %v1764_v22  ;;  %1670 = vmatpush3.msra.mxu0 %v1993_v47 }
 0x35d   :  { %1078 = vmatprep.subr.bf16.mxu1 %v1774_v60  ;;  %1671 = vmatprep.subr.mxu0 %v1772_v36 }
 0x35e   :  { %1672 = vmatpush3.msra.mxu0 %v2000_v48 }
 0x35f   :  { %1673 = vmatprep.subr.mxu0 %v1772_v36 }
 0x360   :  { %1079 = vmatpush1.bf16.msra.mxu1 %v1765_v23  ;;  %1674 = vmatpush3.msra.mxu0 %v2007_v49 }
 0x361   :  { %1080 = vmatprep.subr.bf16.mxu1 %v1774_v60  ;;  %1675 = vmatprep.subr.mxu0 %v1772_v36 }
 0x362   :  { %1676 = vmatpush3.msra.mxu0 %v2017_v50 }
 0x363   :  { %1677 = vmatprep.subr.mxu0 %v1772_v36 }
 0x364   :  { %1081 = vmatpush1.bf16.msra.mxu1 %v1766_v24  ;;  %1678 = vmatpush3.msra.mxu0 %v2026_v51 }
 0x365   :  { %1096 = vmatprep.subr.bf16.mxu1 %v1774_v60  ;;  %1679 = vmatprep.subr.mxu0 %v1772_v36  ;;  %v966_v60 = vrot.slane %v2204_v28, 2 }
 0x366   :  { %1680 = vmatpush3.msra.mxu0 %v2035_v52 }
 0x367   :  { %v967_v0 = vsel %vm954_vm0, %v965_v63, %v966_v60  ;;  %v972_v1 = vsel %vm954_vm0, %v966_v60, %v971_v62 }
 0x368   :  { %1097 = vmatpush2.bf16.msra.mxu1 %v1767_v34  ;;  %v985_v28 = vpack.c.bf16 %v972_v1, %v967_v0 }
 0x369   :  { %1684 = vmatprep.subr.mxu1 %v1772_v36 }
 0x36b   :  { %1099 = vmatmul.mubr.bf16.vlgmr.msra.gmra.mxu1 %v983_v58 }
 0x36c   :  { %1447 = vmatprep.mubr.msk.bf16.mxu1 %vm773_vm14, %v986_v61  ;;  %1685 = vmatpush3.msra.mxu1 %v1903_v37 }
 0x36d   :  { %1686 = vmatprep.subr.mxu1 %v1772_v36 }
 0x36e   :  { %1687 = vmatpush3.msra.mxu1 %v1913_v38 }
 0x36f   :  { %1688 = vmatprep.subr.mxu1 %v1772_v36 }
 0x370   :  { %1689 = vmatpush3.msra.mxu1 %v1921_v39 }
 0x371   :  { %1690 = vmatprep.subr.mxu1 %v1772_v36 }
 0x372   :  { %1691 = vmatpush3.msra.mxu1 %v1930_v40 }
 0x373   :  { %1107 = vmatmul.mubr.bf16.gmra.mxu1 %v985_v28  ;;  %1692 = vmatprep.subr.mxu1 %v1772_v36 }
 0x374   :  { %1693 = vmatpush3.msra.mxu1 %v1939_v41  ;;  %1716 = vmatprep.mubr.msk.f32.mxu1 %vm1773_vm2, %v1772_v36 }
 0x375   :  { %1694 = vmatprep.subr.mxu1 %v1772_v36 }
 0x376   :  { %1695 = vmatpush3.msra.mxu1 %v1948_v42 }
 0x377   :  { %1696 = vmatprep.subr.mxu1 %v1772_v36 }
 0x378   :  { %1697 = vmatpush3.msra.mxu1 %v1957_v43 }
 0x379   :  { %1698 = vmatprep.subr.mxu1 %v1772_v36 }
 0x37a   :  { %1699 = vmatpush3.msra.mxu1 %v1966_v44 }
 0x37b   :  { %1700 = vmatprep.subr.mxu1 %v1772_v36 }
 0x37c   :  { %1701 = vmatpush3.msra.mxu1 %v1975_v45 }
 0x37d   :  { %1702 = vmatprep.subr.mxu1 %v1772_v36 }
 0x37e   :  { %1703 = vmatpush3.msra.mxu1 %v1984_v46 }
 0x37f   :  { %1704 = vmatprep.subr.mxu1 %v1772_v36 }
 0x380   :  { %1705 = vmatpush3.msra.mxu1 %v1993_v47 }
 0x381   :  { %1706 = vmatprep.subr.mxu1 %v1772_v36 }
 0x382   :  { %1707 = vmatpush3.msra.mxu1 %v2000_v48 }
 0x383   :  { %1708 = vmatprep.subr.mxu1 %v1772_v36 }
 0x384   :  { %1709 = vmatpush3.msra.mxu1 %v2007_v49 }
 0x385   :  { %1710 = vmatprep.subr.mxu1 %v1772_v36 }
 0x386   :  { %1711 = vmatpush3.msra.mxu1 %v2017_v50 }
 0x387   :  { %1712 = vmatprep.subr.mxu1 %v1772_v36 }
 0x388   :  { %1713 = vmatpush3.msra.mxu1 %v2026_v51 }
 0x389   :  { %1714 = vmatprep.subr.mxu1 %v1772_v36 }
 0x38a   :  { %1715 = vmatpush3.msra.mxu1 %v2035_v52 }
 0x404   :  { %v923_v37 = vpop.f32.mrf.mxu0 }
 0x406   :  { %v925_v38 = vpop.f32.mrf.mxu0 }
 0x407   :  { %v814_v39 = vpop.f32.mrf.mxu1 }
 0x408   :  { %v926_v40 = vpop.f32.mrf.mxu0  ;;  %v924_v6 = vadd.f32 %v923_v37, %v814_v39 }
 0x409   :  { %v816_v41 = vpop.f32.mrf.mxu1 }
 0x40a   :  { %v928_v42 = vpop.f32.mrf.mxu0 }
 0x40b   :  { %v817_v43 = vpop.f32.mrf.mxu1  ;;  %v1322_v42 = vsub.s32 3, %v2051_v20 }
 0x40c   :  { %v931_v44 = vpop.f32.mrf.mxu0  ;;  %v927_v52 = vadd.f32 %v926_v40, %v817_v43 }
 0x40d   :  { %v819_v45 = vpop.f32.mrf.mxu1 }
 0x40e   :  { %v933_v46 = vpop.f32.mrf.mxu0 }
 0x40f   :  { %v822_v47 = vpop.f32.mrf.mxu1  ;;  %v1323_v46 = vrot.slane %v2124_v10, %v1322_v42 }
 0x410   :  { %v934_v48 = vpop.f32.mrf.mxu0  ;;  %v932_v7 = vadd.f32 %v931_v44, %v822_v47  ;;  %v1314_v44 = vsub.s32 2, %v2051_v20 }
 0x411   :  { %v824_v49 = vpop.f32.mrf.mxu1 }
 0x412   :  { %v936_v50 = vpop.f32.mrf.mxu0 }
 0x413   :  { %v825_v2 = vpop.f32.mrf.mxu1 }
 0x414   :  { %v935_v15 = vadd.f32 %v934_v48, %v825_v2 }
 0x415   :  { %v827_v51 = vpop.f32.mrf.mxu1 }
 0x42b   :  { %v1100_v3 = vpop.f32.mrf.mxu1 }
 0x42c   :  { %v1115_v11 = vadd.f32 %v1100_v3, %v924_v6 }
 0x42d   :  { %v1102_v36 = vpop.f32.mrf.mxu1 }
 0x42f   :  { %v1103_v4 = vpop.f32.mrf.mxu1 }
 0x430   :  { %v1116_v8 = vadd.f32 %v1103_v4, %v927_v52 }
 0x431   :  { %v1105_v5 = vpop.f32.mrf.mxu1 }
 0x432   :  { %v1119_v16 = vadd.f32 %v1116_v8, %v1115_v11 }
 0x433   :  { %v1108_v9 = vpop.f32.mrf.mxu1 }
 0x434   :  { %v1117_v13 = vadd.f32 %v1108_v9, %v932_v7 }
 0x435   :  { %v1110_v14 = vpop.f32.mrf.mxu1 }
 0x436   :  { %v1120_v18 = vadd.f32 %v1119_v16, %v1117_v13 }
 0x437   :  { %v1111_v17 = vpop.f32.mrf.mxu1 }
 0x438   :  { %v1118_v19 = vadd.f32 %v1111_v17, %v935_v15 }
 0x439   :  { %v1113_v22 = vpop.f32.mrf.mxu1 }
 0x43a   :  { %v1121_v23 = vadd.f32 %v1120_v18, %v1118_v19 }
 0x43c   :  { %v1122_v24 = vrot.slane %v1121_v23, 4 }
 0x43e   :  { %v1123_v29 = vadd.f32 %v1122_v24, %v1121_v23 }
 0x440   :  { %v1124_v30 = vrot.slane %v1123_v29, 2 }
 0x442   :  { %v1125_v31 = vadd.f32 %v1124_v30, %v1123_v29 }
 0x444   :  { %v1126_v32 = vrot.slane %v1125_v31, 1 }
 0x446   :  { %v1127_v33 = vadd.f32 %v1126_v32, %v1125_v31 }
 0x448   :  { %v1128_v26 = vmul.f32 0.03125, %v1127_v33 }
 0x44a   :  { %1682 = vmatmul.mubr.f32.vlgmr.msra.gmra.mxu0 %v1128_v26 }
 0x50a   :  { %v1211_v27 = vpop.f32.mrf.mxu0 }
 0x50b   :  { %v1218_v34 = vrot.slane %v1211_v27, %v2054_v21 }
 0x50c   :  { %v1683_v35 = vpop.f32.mrf.mxu0 }
 0x50d   :  { %v1219_v53 = vsub.f32 %v1115_v11, %v1218_v34  ;;  %v1220_v12 = vsub.f32 %v1116_v8, %v1218_v34  ;;  %v1221_v54 = vsub.f32 %v1117_v13, %v1218_v34  ;;  %v1222_v25 = vsub.f32 %v1118_v19, %v1218_v34 }
 0x50f   :  { %v1223_v55 = vmul.f32 %v1219_v53, %v1219_v53  ;;  %v1224_v56 = vmul.f32 %v1220_v12, %v1220_v12  ;;  %v1225_v57 = vmul.f32 %v1221_v54, %v1221_v54  ;;  %v1226_v59 = vmul.f32 %v1222_v25, %v1222_v25 }
 0x511   :  { %v1227_v58 = vadd.f32 %v1224_v56, %v1223_v55 }
 0x513   :  { %v1228_v60 = vadd.f32 %v1227_v58, %v1225_v57 }
 0x515   :  { %v1229_v61 = vadd.f32 %v1228_v60, %v1226_v59 }
 0x517   :  { %v1230_v62 = vrot.slane %v1229_v61, 4 }
 0x519   :  { %v1231_v63 = vadd.f32 %v1230_v62, %v1229_v61 }
 0x51b   :  { %v1232_v0 = vrot.slane %v1231_v63, 2 }
 0x51d   :  { %v1233_v1 = vadd.f32 %v1232_v0, %v1231_v63 }
 0x51f   :  { %v1234_v28 = vrot.slane %v1233_v1, 1 }
 0x521   :  { %v1235_v37 = vadd.f32 %v1234_v28, %v1233_v1 }
 0x523   :  { %v1236_v38 = vmul.f32 0.03125, %v1235_v37 }
 0x525   :  { %1717 = vmatmul.mubr.f32.vlgmr.msra.gmra.mxu1 %v1236_v38 }
 0x5e5   :  { %v1303_v21 = vpop.f32.mrf.mxu1 }
 0x5e6   :  { %v1304_v39 = vadd.f32 1e-05, %v1303_v21 }
 0x5e7   :  { %v1718_v40 = vpop.f32.mrf.mxu1 }
 0x5e8   :  { %1770 = vrsqrt.f32 %v1304_v39 }
 0x5f5   :  { %v1771_v41 = vpop.eup %1770 }
 0x5f6   :  { %v1309_v43 = vrot.slane %v1771_v41, 6 }
 0x5f8   :  { %v1311_v45 = vmul.f32 %v1309_v43, %v2124_v10 }
 0x5fa   :  { %v1315_v47 = vrot.slane %v1311_v45, %v1314_v44 }
 0x5fc   :  { %v1316_v48 = vmul.f32 %v1315_v47, %v1219_v53  ;;  %v1317_v49 = vmul.f32 %v1315_v47, %v1220_v12  ;;  %v1318_v50 = vmul.f32 %v1315_v47, %v1221_v54  ;;  %v1319_v2 = vmul.f32 %v1315_v47, %v1222_v25 }
 0x5fe   :  { %v1324_v51 = vadd.f32 %v1323_v46, %v1316_v48  ;;  %v1325_v3 = vadd.f32 %v1323_v46, %v1317_v49  ;;  %v1326_v36 = vadd.f32 %v1323_v46, %v1318_v50  ;;  %v1327_v4 = vadd.f32 %v1323_v46, %v1319_v2 }
 0x600   :  { %v1328_v52 = vmax.f32 %v1324_v51, 0.0  ;;  %v1329_v5 = vmax.f32 %v1325_v3, 0.0  ;;  %v1330_v6 = vmax.f32 %v1326_v36, 0.0  ;;  %v1331_v7 = vmax.f32 %v1327_v4, 0.0 }
 0x602   :  { %1332 = vst [vmem:[%s2352_s5] sm:$0xff] %v1328_v52  ;;  %1333 = vst [vmem:[%s2352_s5 + $0x8] sm:$0xff] %v1329_v5 }
 0x603   :  { %1334 = vst [vmem:[%s2352_s5 + $0x10] sm:$0xff] %v1330_v6  ;;  %1335 = vst [vmem:[%s2352_s5 + $0x18] sm:$0xff] %v1331_v7 }

</bundles_post_ra>
